<compile_context>
chip_gen: v7x
topology: tpu7x:2x2x1
jax: 0.10.0
libtpu: 0.0.40
codegen_flags: <defaults>
</compile_context>

<pallas_src>
import functools

import jax
import jax.numpy as jnp
import numpy as np
from jax import lax
from jax.experimental import pallas as pl
from jax.experimental.pallas import tpu as pltpu

EPS = 1e-4      # matches F.cosine_similarity(..., eps=0.0001)
_LANES = 128    # lane width; per-block partial loss tile width


def _cosine_loss_kernel(e1_ref, e2_ref, w_ref, b_ref, y_ref,
                        score_ref, partial_ref, prods_ref):
    tb = e1_ref.shape[0]          # batch tile (static)
    dout = w_ref.shape[0]

    # --- shared linear layer, weight in native (Dout, Din) layout (trans-B).
    def linear(e_ref):
        return lax.dot_general(
            e_ref[...], w_ref[...],
            dimension_numbers=(((1,), (1,)), ((), ())),   # contract Din
            preferred_element_type=jnp.float32,
        ) + b_ref[...]                                    # (TB, Dout) + (1, Dout)

    r1 = linear(e1_ref)                                   # (TB, Dout), f32
    r2 = linear(e2_ref)                                   # (TB, Dout), f32

    # --- fused per-row reductions: one MXU push over a (3*TB, Dout) slab.
    prods_ref[0:tb, :] = r1 * r2
    prods_ref[tb:2 * tb, :] = r1 * r1
    prods_ref[2 * tb:3 * tb, :] = r2 * r2
    ones_row = jnp.ones((1, dout), jnp.float32)
    sums = lax.dot_general(
        ones_row, prods_ref[...],
        dimension_numbers=(((1,), (1,)), ((), ())),
        preferred_element_type=jnp.float32,
    )                                                     # (1, 3*TB), lane-dense
    w12 = sums[:, 0:tb]                                   # sum_j r1*r2
    s11 = sums[:, tb:2 * tb]                              # ||r1||^2
    s22 = sums[:, 2 * tb:3 * tb]                          # ||r2||^2

    # cosine similarity with PER-NORM eps clamp (F.cosine_similarity semantics):
    #   w12 / (max(||r1||, eps) * max(||r2||, eps))
    score = (w12
             * lax.rsqrt(jnp.maximum(s11, EPS * EPS))
             * lax.rsqrt(jnp.maximum(s22, EPS * EPS)))    # (1, TB)

    score_ref[...] = score.astype(score_ref.dtype)        # lane-dense store

    # per-block partial sum of squared errors (mean finished in the wrapper).
    diff = score - y_ref[...]                              # (1, TB)
    sse = jnp.sum(diff * diff, axis=1, keepdims=True)      # (1, 1)
    partial_ref[...] = sse * jnp.ones((1, _LANES), jnp.float32)


@functools.partial(jax.jit, static_argnames=("block_b", "matmul_dtype"))
def cosine_distance_loss(emb1, emb2, true_label, weight, bias,
                         *, block_b=None, matmul_dtype=None):
    """JAX/Pallas equivalent of the PyTorch forward (reduce_cls_vec=True).

    emb1, emb2: (B, word_vec_dim)
    true_label: (B,)
    weight:     (out_dim, word_vec_dim)  -- native nn.Linear layout (no transpose)
    bias:       (out_dim,)
    returns (loss: scalar, score: (B,))
    """
    B, din = emb1.shape
    dout, din_w = weight.shape
    assert din_w == din

    # Cast only the MXU operands for production sizes (keep f32 for the test).
    if matmul_dtype is not None:
        emb1 = emb1.astype(matmul_dtype)
        emb2 = emb2.astype(matmul_dtype)
        weight = weight.astype(matmul_dtype)

    if block_b is None:
        block_b = 128 if B % 128 == 0 else B
    # TODO(synk): pad B (and mask the tail) for batches not divisible by the tile.
    assert B % block_b == 0, "B must be a multiple of the batch tile"
    nb = B // block_b

    b_row = bias.reshape(1, dout).astype(jnp.float32)      # broadcast row
    y_row = true_label.reshape(1, B).astype(jnp.float32)   # lane-dense labels

    score_row, partial = pl.pallas_call(
        _cosine_loss_kernel,
        out_shape=(
            jax.ShapeDtypeStruct((1, B), jnp.float32),            # score
            jax.ShapeDtypeStruct((1, nb * _LANES), jnp.float32),  # per-block SSE
        ),
        grid=(nb,),
        in_specs=[
            pl.BlockSpec((block_b, din), lambda i: (i, 0)),   # emb1 tile
            pl.BlockSpec((block_b, din), lambda i: (i, 0)),   # emb2 tile
            pl.BlockSpec((dout, din), lambda i: (0, 0)),      # weight, resident
            pl.BlockSpec((1, dout), lambda i: (0, 0)),        # bias, resident
            pl.BlockSpec((1, block_b), lambda i: (0, i)),     # labels tile
        ],
        out_specs=(
            pl.BlockSpec((1, block_b), lambda i: (0, i)),     # score tile
            pl.BlockSpec((1, _LANES), lambda i: (0, i)),      # partial SSE tile
        ),
        scratch_shapes=[pltpu.VMEM((3 * block_b, dout), jnp.float32)],
        compiler_params=pltpu.CompilerParams(
            dimension_semantics=("parallel",),
        ),
    )(emb1, emb2, weight, b_row, y_row)

    score = score_row[0, :]
    # Finish the MSE mean on the (tiny) per-block partials: lane 0 of each block.
    loss = jnp.sum(partial[0, ::_LANES]) / B
    return loss, score


def _init_params(key, word_vec_dim, out_dim):
    """Deterministic synthetic init mirroring nn.Linear + xavier_uniform_."""
    kw, kb = jax.random.split(key)
    bound_w = (6.0 / (word_vec_dim + out_dim)) ** 0.5          # xavier_uniform_
    weight = jax.random.uniform(kw, (out_dim, word_vec_dim),
                                minval=-bound_w, maxval=bound_w,
                                dtype=jnp.float32)
    bound_b = 1.0 / (word_vec_dim ** 0.5)                       # nn.Linear bias init
    bias = jax.random.uniform(kb, (out_dim,),
                              minval=-bound_b, maxval=bound_b,
                              dtype=jnp.float32)
    return weight, bias


if __name__ == "__main__":
    key = jax.random.PRNGKey(0)
    k1, k2, k3, kp = jax.random.split(key, 4)

    # Small but tile-exercising shapes: two 128-row batch tiles.
    B, word_vec_dim, out_dim = 256, 64, 32

    emb1 = jax.random.normal(k1, (B, word_vec_dim), dtype=jnp.float32)
    emb2 = jax.random.normal(k2, (B, word_vec_dim), dtype=jnp.float32)
    true_label = jax.random.uniform(k3, (B,), minval=-1.0, maxval=1.0,
                                    dtype=jnp.float32)
    weight, bias = _init_params(kp, word_vec_dim, out_dim)

    loss, score = cosine_distance_loss(emb1, emb2, true_label, weight, bias)
    jax.block_until_ready((loss, score))

    # float64 numpy reference (same math as the PyTorch forward).
    e1 = np.asarray(emb1, np.float64)
    e2 = np.asarray(emb2, np.float64)
    w = np.asarray(weight, np.float64)
    b = np.asarray(bias, np.float64)
    y = np.asarray(true_label, np.float64)
    r1 = e1 @ w.T + b
    r2 = e2 @ w.T + b
    dot = (r1 * r2).sum(-1)
    denom = (np.maximum(np.linalg.norm(r1, axis=-1), EPS)
             * np.maximum(np.linalg.norm(r2, axis=-1), EPS))
    ref_score = dot / denom
    ref_loss = np.mean((ref_score - y) ** 2)

    assert np.allclose(np.asarray(score), ref_score, atol=1e-3, rtol=1e-3), "score mismatch"
    assert np.allclose(float(loss), ref_loss, atol=1e-3, rtol=1e-3), "loss mismatch"

    print("KERNEL_OK")
</pallas_src>

<mosaic_0001>
module attributes {stable_mosaic.version = 11 : i64} {
  func.func @_cosine_loss_kernel(%arg0: i32, %arg1: memref<128x64xf32, #tpu.memory_space<vmem>>, %arg2: memref<128x64xf32, #tpu.memory_space<vmem>>, %arg3: memref<32x64xf32, #tpu.memory_space<vmem>>, %arg4: memref<1x32xf32, #tpu.memory_space<vmem>>, %arg5: memref<1x128xf32, #tpu.memory_space<vmem>>, %arg6: memref<1x128xf32, #tpu.memory_space<vmem>>, %arg7: memref<1x128xf32, #tpu.memory_space<vmem>>, %arg8: memref<384x32xf32, #tpu.memory_space<vmem>>) attributes {dimension_semantics = [#tpu.dimension_semantics<parallel>], iteration_bounds = array<i64: 2>, scalar_prefetch = 0 : i64, scratch_operands = 1 : i64, tpu.core_type = #tpu.core_type<tc>, window_params = [{transform_indices = @transform_0, window_bounds = array<i64: 128, 64>}, {transform_indices = @transform_1, window_bounds = array<i64: 128, 64>}, {pipeline_mode = #tpu.pipeline_mode<synchronous>, transform_indices = @transform_2, window_bounds = array<i64: 32, 64>}, {pipeline_mode = #tpu.pipeline_mode<synchronous>, transform_indices = @transform_3, window_bounds = array<i64: 1, 32>}, {transform_indices = @transform_4, window_bounds = array<i64: 1, 128>}, {transform_indices = @transform_5, window_bounds = array<i64: 1, 128>}, {transform_indices = @transform_6, window_bounds = array<i64: 1, 128>}]} {
    %c0 = arith.constant 0 : index
    %c0_0 = arith.constant 0 : index
    %0 = vector.load %arg1[%c0, %c0_0] : memref<128x64xf32, #tpu.memory_space<vmem>>, vector<128x64xf32>
    %c0_1 = arith.constant 0 : index
    %c0_2 = arith.constant 0 : index
    %1 = vector.load %arg3[%c0_1, %c0_2] : memref<32x64xf32, #tpu.memory_space<vmem>>, vector<32x64xf32>
    %cst = arith.constant dense<0.000000e+00> : vector<128x32xf32>
    %2 = tpu.matmul %0, %1, %cst {dimension_numbers = #tpu.dot_dimension_numbers<[1], [1], [0], [0], [0, 0, 1, 0], [], []>} : vector<128x64xf32>, vector<32x64xf32>, vector<128x32xf32> -> vector<128x32xf32>
    %c0_3 = arith.constant 0 : index
    %c0_4 = arith.constant 0 : index
    %3 = vector.load %arg4[%c0_3, %c0_4] : memref<1x32xf32, #tpu.memory_space<vmem>>, vector<1x32xf32>
    %4 = vector.broadcast %3 : vector<1x32xf32> to vector<128x32xf32>
    %5 = arith.addf %2, %4 : vector<128x32xf32>
    %c0_5 = arith.constant 0 : index
    %c0_6 = arith.constant 0 : index
    %6 = vector.load %arg2[%c0_5, %c0_6] : memref<128x64xf32, #tpu.memory_space<vmem>>, vector<128x64xf32>
    %c0_7 = arith.constant 0 : index
    %c0_8 = arith.constant 0 : index
    %7 = vector.load %arg3[%c0_7, %c0_8] : memref<32x64xf32, #tpu.memory_space<vmem>>, vector<32x64xf32>
    %cst_9 = arith.constant dense<0.000000e+00> : vector<128x32xf32>
    %8 = tpu.matmul %6, %7, %cst_9 {dimension_numbers = #tpu.dot_dimension_numbers<[1], [1], [0], [0], [0, 0, 1, 0], [], []>} : vector<128x64xf32>, vector<32x64xf32>, vector<128x32xf32> -> vector<128x32xf32>
    %c0_10 = arith.constant 0 : index
    %c0_11 = arith.constant 0 : index
    %9 = vector.load %arg4[%c0_10, %c0_11] : memref<1x32xf32, #tpu.memory_space<vmem>>, vector<1x32xf32>
    %10 = vector.broadcast %9 : vector<1x32xf32> to vector<128x32xf32>
    %11 = arith.addf %8, %10 : vector<128x32xf32>
    %12 = arith.mulf %5, %11 : vector<128x32xf32>
    %c0_12 = arith.constant 0 : index
    %c0_13 = arith.constant 0 : index
    %13 = vector.load %arg8[%c0_12, %c0_13] : memref<384x32xf32, #tpu.memory_space<vmem>>, vector<128x32xf32>
    tpu.vector_store %arg8[%c0_12, %c0_13], %12 {strides = array<i32>} : memref<384x32xf32, #tpu.memory_space<vmem>>, vector<128x32xf32>,
    %14 = arith.mulf %5, %5 : vector<128x32xf32>
    %c128 = arith.constant 128 : index
    %c0_14 = arith.constant 0 : index
    %15 = vector.load %arg8[%c128, %c0_14] : memref<384x32xf32, #tpu.memory_space<vmem>>, vector<128x32xf32>
    tpu.vector_store %arg8[%c128, %c0_14], %14 {strides = array<i32>} : memref<384x32xf32, #tpu.memory_space<vmem>>, vector<128x32xf32>,
    %16 = arith.mulf %11, %11 : vector<128x32xf32>
    %c256 = arith.constant 256 : index
    %c0_15 = arith.constant 0 : index
    %17 = vector.load %arg8[%c256, %c0_15] : memref<384x32xf32, #tpu.memory_space<vmem>>, vector<128x32xf32>
    tpu.vector_store %arg8[%c256, %c0_15], %16 {strides = array<i32>} : memref<384x32xf32, #tpu.memory_space<vmem>>, vector<128x32xf32>,
    %cst_16 = arith.constant 1.000000e+00 : f32
    %18 = vector.broadcast %cst_16 : f32 to vector<1x32xf32>
    %c0_17 = arith.constant 0 : index
    %c0_18 = arith.constant 0 : index
    %19 = vector.load %arg8[%c0_17, %c0_18] : memref<384x32xf32, #tpu.memory_space<vmem>>, vector<384x32xf32>
    %cst_19 = arith.constant dense<0.000000e+00> : vector<1x384xf32>
    %20 = tpu.matmul %18, %19, %cst_19 {dimension_numbers = #tpu.dot_dimension_numbers<[1], [1], [0], [0], [0, 0, 1, 0], [], []>} : vector<1x32xf32>, vector<384x32xf32>, vector<1x384xf32> -> vector<1x384xf32>
    %21 = vector.extract_strided_slice %20 {offsets = [0, 0], sizes = [1, 128], strides = [1, 1]} : vector<1x384xf32> to vector<1x128xf32>
    %22 = vector.extract_strided_slice %20 {offsets = [0, 128], sizes = [1, 128], strides = [1, 1]} : vector<1x384xf32> to vector<1x128xf32>
    %23 = vector.extract_strided_slice %20 {offsets = [0, 256], sizes = [1, 128], strides = [1, 1]} : vector<1x384xf32> to vector<1x128xf32>
    %cst_20 = arith.constant 9.99999993E-9 : f32
    %24 = vector.broadcast %cst_20 : f32 to vector<1x128xf32>
    %25 = arith.maximumf %22, %24 : vector<1x128xf32>
    %26 = math.rsqrt %25 : vector<1x128xf32>
    %27 = arith.mulf %21, %26 : vector<1x128xf32>
    %cst_21 = arith.constant 9.99999993E-9 : f32
    %28 = vector.broadcast %cst_21 : f32 to vector<1x128xf32>
    %29 = arith.maximumf %23, %28 : vector<1x128xf32>
    %30 = math.rsqrt %29 : vector<1x128xf32>
    %31 = arith.mulf %27, %30 : vector<1x128xf32>
    %c0_22 = arith.constant 0 : index
    %c0_23 = arith.constant 0 : index
    %32 = vector.load %arg6[%c0_22, %c0_23] : memref<1x128xf32, #tpu.memory_space<vmem>>, vector<1x128xf32>
    tpu.vector_store %arg6[%c0_22, %c0_23], %31 {strides = array<i32>} : memref<1x128xf32, #tpu.memory_space<vmem>>, vector<1x128xf32>,
    %c0_24 = arith.constant 0 : index
    %c0_25 = arith.constant 0 : index
    %33 = vector.load %arg5[%c0_24, %c0_25] : memref<1x128xf32, #tpu.memory_space<vmem>>, vector<1x128xf32>
    %34 = arith.subf %31, %33 : vector<1x128xf32>
    %35 = arith.mulf %34, %34 : vector<1x128xf32>
    %cst_26 = arith.constant dense<0.000000e+00> : vector<1xf32>
    %36 = vector.multi_reduction <add>, %35, %cst_26 [1] : vector<1x128xf32> to vector<1xf32>
    %37 = vector.shape_cast %36 : vector<1xf32> to vector<1x1xf32>
    %cst_27 = arith.constant 1.000000e+00 : f32
    %38 = vector.broadcast %cst_27 : f32 to vector<1x128xf32>
    %39 = vector.broadcast %37 : vector<1x1xf32> to vector<1x128xf32>
    %40 = arith.mulf %39, %38 : vector<1x128xf32>
    %c0_28 = arith.constant 0 : index
    %c0_29 = arith.constant 0 : index
    %41 = vector.load %arg7[%c0_28, %c0_29] : memref<1x128xf32, #tpu.memory_space<vmem>>, vector<1x128xf32>
    tpu.vector_store %arg7[%c0_28, %c0_29], %40 {strides = array<i32>} : memref<1x128xf32, #tpu.memory_space<vmem>>, vector<1x128xf32>,
    return
  }
  func.func @transform_0(%arg0: i32) -> (i32, i32) {
    %c0_i32 = arith.constant 0 : i32
    %c0_i32_0 = arith.constant 0 : i32
    return %arg0, %c0_i32 : i32, i32
  }
  func.func @transform_1(%arg0: i32) -> (i32, i32) {
    %c0_i32 = arith.constant 0 : i32
    %c0_i32_0 = arith.constant 0 : i32
    return %arg0, %c0_i32 : i32, i32
  }
  func.func @transform_2(%arg0: i32) -> (i32, i32) {
    %c0_i32 = arith.constant 0 : i32
    %c0_i32_0 = arith.constant 0 : i32
    %c0_i32_1 = arith.constant 0 : i32
    return %c0_i32, %c0_i32_0 : i32, i32
  }
  func.func @transform_3(%arg0: i32) -> (i32, i32) {
    %c0_i32 = arith.constant 0 : i32
    %c0_i32_0 = arith.constant 0 : i32
    %c0_i32_1 = arith.constant 0 : i32
    return %c0_i32, %c0_i32_0 : i32, i32
  }
  func.func @transform_4(%arg0: i32) -> (i32, i32) {
    %c0_i32 = arith.constant 0 : i32
    %c0_i32_0 = arith.constant 0 : i32
    return %c0_i32, %arg0 : i32, i32
  }
  func.func @transform_5(%arg0: i32) -> (i32, i32) {
    %c0_i32 = arith.constant 0 : i32
    %c0_i32_0 = arith.constant 0 : i32
    return %c0_i32, %arg0 : i32, i32
  }
  func.func @transform_6(%arg0: i32) -> (i32, i32) {
    %c0_i32 = arith.constant 0 : i32
    %c0_i32_0 = arith.constant 0 : i32
    return %c0_i32, %arg0 : i32, i32
  }
}

</mosaic_0001>

<bundles_post_ra>
// kernel: cosine_distance_loss.1
= control target key start
LH: loop header
LB: loop body
LE: loop exit
PB: predicated region body
PF: predicated region fallthrough
CT: control target
= control target key end

     0   :  { %12 = vsyncpa [#allocation4], 0  ;;  %s2214_s0 = inlined_call_operand.vmem [shape: f32[256,64], index: 0, kind: input, shape index: {}]   ;;  %s2215_s1 = inlined_call_operand.vmem [shape: f32[256,64], index: 1, kind: input, shape index: {}]   ;;  %s2216_s2 = inlined_call_operand.vmem [shape: f32[32,64], index: 2, kind: input, shape index: {}]   ;;  %s2217_s3 = inlined_call_operand.vmem [shape: f32[1,32], index: 3, kind: input, shape index: {}]   ;;  %s2218_s4 = inlined_call_operand.vmem [shape: f32[1,256], index: 4, kind: input, shape index: {}]   ;;  %s2219_s5 = inlined_call_operand.hbm [shape: f32[1,256], index: 5, kind: output, shape index: {0}]   ;;  %s2220_s6 = inlined_call_operand.vmem [shape: f32[1,256], index: 6, kind: output, shape index: {1}]  }
   0x1   :  { %14 = vsyncpa [#allocation4 + $0x1], 0  ;;  %s1847_s21 = smov 0   ;;  %s1849_s22 = smov 0  }
   0x2   :  { %s1851_s23 = smov 0   ;;  %s1853_s24 = smov 0  }
   0x3 LB: > { %s1868_s25 = sadd.s32 4294967295, %s1805_s24   ;;  %s1300_s26 = sadd.s32 4294967294, %s1805_s24   ;;  %s1805_s24 = sphi %s1853_s24, %s2230_s24   ;;  %s1801_s23 = sphi %s1851_s23, %s2229_s23   ;;  %s1797_s22 = sphi %s1849_s22, %s2228_s22   ;;  %s1793_s21 = sphi %s1847_s21, %s2227_s21  }
   0x4   : > { %s1872_s27 = sadd.s32 1, %s1805_s24   ;;  %s147_s28 = sadd.s32 1, %s1801_s23 }
   0x5   : > { %s144_s29 = ssub.s32 %s1805_s24, %s1872_s27  ;;  %p157_p0 = scmp.ne.s32.totalorder %s1801_s23, %s1797_s22 }
   0x6   : > { %p145_p1 = scmp.eq.s32.totalorder %s144_s29, 0  ;;  %p158_p2 = scmp.eq.s32.totalorder %s1868_s25, 1 }
   0x7   : > { %p163_p3 = scmp.ne.s32.totalorder %s1797_s22, %s1793_s21  ;;  %p164_p4 = scmp.eq.s32.totalorder %s1300_s26, 1 }
   0x8   : > { %s1883_s30 = scalar_select %p145_p1, %s1801_s23, %s147_s28  }
   0x9   : > { %p1885_p5 = por %p158_p2, %p157_p0  ;;  %p1889_p6 = por %p164_p4, %p163_p3 }
   0xa   : > { %p1303_p7 = scmp.ge.s32.totalorder %s1805_s24, 1  ;;  %p238_p8 = scmp.lt.s32.totalorder %s1805_s24, 3 }
   0xc   : > { %p239_p9 = pnand %p1303_p7, %p238_p8 }
   0xd   : > { %v312_v0 = vld [vmem:[%s2216_s2] sm:$0xff] (!%p239_p9)  ;;  %v313_v1 = vld [vmem:[%s2216_s2 + $0x8] sm:$0xff] (!%p239_p9)  ;;  %vm323_vm0 = vcmask (!%p239_p9), 523264   ;;  %v314_v2 = vld [vmem:[%s2216_s2 + $0x10] sm:$0xff] (!%p239_p9)  ;;  %s1905_s15 = sshll.u32 (!%p239_p9), %s1868_s25, 4  ;;  %v1807_v39 = vmov (!%p239_p9), 0.0|0.0  }
   0xe   : > { %242 = sbr.rel (%p239_p9) target bundleno = 702 (0x2be), region = 40  ;;  %v1592_v3 = vpack.c.bf16 (!%p239_p9), %v313_v1, %v312_v0  ;;  %vm1909_vm1 = vmpackc.low (!%p239_p9), %vm323_vm0, %vm323_vm0  ;;  %v315_v5 = vld [vmem:[%s2216_s2 + $0x18] sm:$0xff] (!%p239_p9)  ;;  %p279_p10 = scmp.lt.s32.totalorder (!%p239_p9), %s1905_s15, 31  ;;  %vm754_vm2 = vcmask (!%p239_p9), 261120   ;;  %v1808_v40 = vmov (!%p239_p9), 1.0   ;;  %vm1809_vm3 = vmmov (!%p239_p9), 0  }
   0xf   : > { %v1598_v6 = vpack.c.bf16 (!%p239_p9), %v315_v5, %v314_v2  ;;  %v1810_v41 = vmov (!%p239_p9), 0.0   ;;  %v2014_v42 = vld [vmem:[%s2217_s3] ss:$0 sm:$0xff] (!%p239_p9)  ;;  %vm2042_vm4 = vmpackc.low (!%p239_p9), %vm754_vm2, %vm754_vm2  ;;  %p290_p11 = scmp.lt.s32.totalorder (!%p239_p9), %s1868_s25, 1  ;;  %s271_s17 = sand.u32 (!%p239_p9), 1, %s1797_s22   ;;  %vm1181_vm5 = vcmask (!%p239_p9), 1040384  }
  0x10   : > { %1594 = vmatprep.subr.msk.bf16.mxu0 (!%p239_p9), %vm1909_vm1, %v1592_v3  ;;  %1606 = vmatprep.subr.msk.bf16.mxu1 (!%p239_p9), %vm1909_vm1, %v1592_v3  ;;  %s1187_s29 = scalar_lea.sflag (!%p239_p9), [#allocation4], %s271_s17 }
  0x11   : > { %1597 = vmatpush3.bf16.xpose.msk.msra.mxu0 (!%p239_p9), %vm1909_vm1, %v1592_v3  ;;  %1609 = vmatpush3.bf16.xpose.msk.msra.mxu1 (!%p239_p9), %vm1909_vm1, %v1592_v3 }
  0x12   : > { %1600 = vmatprep.subr.msk.bf16.mxu0 (!%p239_p9), %vm1909_vm1, %v1598_v6  ;;  %1612 = vmatprep.subr.msk.bf16.mxu1 (!%p239_p9), %vm1909_vm1, %v1598_v6 }
  0x15   : > { %s280_s18 = scalar_select %p279_p10, %s1905_s15, 31 }
  0x16   : > { %s2232_s25 = smov (!%p290_p11, %s1868_s25), 1 }
  0x17   : > { %s1305_s19 = sshll.u32 %s280_s18, 3  ;;  %s292_s16 = scalar_lea.vmem %s2218_s4, %s2232_s25 }
  0x18   : > { %s1933_s28 = scalar_lea.vmem %s2214_s0, %s1305_s19  ;;  %s1938_s10 = scalar_lea.vmem %s2215_s1, %s1305_s19 }
  0x19   : > { %v296_v7 = vld [vmem:[%s1933_s28] sm:$0xff]  ;;  %1603 = vmatpush3.bf16.xpose.msk.msra.mxu0 %vm1909_vm1, %v1598_v6  ;;  %1615 = vmatpush3.bf16.xpose.msk.msra.mxu1 %vm1909_vm1, %v1598_v6  ;;  %v297_v9 = vld [vmem:[%s1933_s28 + $0x8] sm:$0xff]  ;;  %v298_v11 = vld [vmem:[%s1933_s28 + $0x10] sm:$0xff]  ;;  %s272_s18 = scalar_lea.vmem [#allocation3], %s271_s17 }
  0x1a   : > { %v529_v8 = vld [vmem:[%s1938_s10] sm:$0xff]  ;;  %1501 = vmatprep.mubr.msk.f32.mxu0 %vm323_vm0, %v296_v7  ;;  %v530_v10 = vld [vmem:[%s1938_s10 + $0x8] sm:$0xff]  ;;  %v531_v12 = vld [vmem:[%s1938_s10 + $0x10] sm:$0xff]  ;;  %1664 = vmatprep.subr.bf16.mxu1 %v1807_v39  ;;  %s1202_s19 = sshll.u32 %s272_s18, 4  ;;  %s1203_s19 = int_to_ptr.vmem [resolvable:$true] %s1202_s19 }
  0x1b   : > { %1533 = vmatprep.mubr.msk.f32.mxu1 %vm323_vm0, %v529_v8  ;;  %v299_v13 = vld [vmem:[%s1933_s28 + $0x18] sm:$0xff]  ;;  %v300_v15 = vld [vmem:[%s1933_s28 + $0x20] sm:$0xff]  ;;  %v301_v17 = vld [vmem:[%s1933_s28 + $0x28] sm:$0xff]  ;;  %s1743_s9 = scalar_lea.vmem %s1203_s19, 16 }
  0x1c   : > { %v532_v14 = vld [vmem:[%s1938_s10 + $0x18] sm:$0xff]  ;;  %v533_v16 = vld [vmem:[%s1938_s10 + $0x20] sm:$0xff]  ;;  %v534_v18 = vld [vmem:[%s1938_s10 + $0x28] sm:$0xff]  ;;  %p1744_p12 = scmp.ne.s32.totalorder %s1203_s19, %s1743_s9 }
  0x1d   : > { %v302_v19 = vld [vmem:[%s1933_s28 + $0x30] sm:$0xff]  ;;  %v303_v21 = vld [vmem:[%s1933_s28 + $0x38] sm:$0xff]  ;;  %v304_v23 = vld [vmem:[%s1933_s28 + $0x40] sm:$0xff] }
  0x1e   : > { %v535_v20 = vld [vmem:[%s1938_s10 + $0x30] sm:$0xff]  ;;  %v536_v22 = vld [vmem:[%s1938_s10 + $0x38] sm:$0xff]  ;;  %v537_v24 = vld [vmem:[%s1938_s10 + $0x40] sm:$0xff]  ;;  %p1745_p13 = pnand %p1744_p12, %p1885_p5 }
  0x1f   : > { %v305_v25 = vld [vmem:[%s1933_s28 + $0x48] sm:$0xff]  ;;  %v306_v27 = vld [vmem:[%s1933_s28 + $0x50] sm:$0xff]  ;;  %v307_v29 = vld [vmem:[%s1933_s28 + $0x58] sm:$0xff] }
  0x20   : > { %1502 = vmatmul.mubr.msk.f32.vlgmr.msra.gmra.mrb[0].mxu0 %vm323_vm0, %v297_v9  ;;  %1534 = vmatmul.mubr.msk.f32.vlgmr.msra.gmra.mrb[0].mxu1 %vm323_vm0, %v530_v10  ;;  %v538_v26 = vld [vmem:[%s1938_s10 + $0x48] sm:$0xff]  ;;  %v539_v28 = vld [vmem:[%s1938_s10 + $0x50] sm:$0xff]  ;;  %v540_v30 = vld [vmem:[%s1938_s10 + $0x58] sm:$0xff]  ;;  %p1746_p0 = pneg %p1745_p13 }
  0x21   : > { %1504 = vmatprep.mubr.msk.f32.mxu0 %vm323_vm0, %v298_v11  ;;  %1536 = vmatprep.mubr.msk.f32.mxu1 %vm323_vm0, %v531_v12  ;;  %v308_v31 = vld [vmem:[%s1933_s28 + $0x60] sm:$0xff]  ;;  %v309_v33 = vld [vmem:[%s1933_s28 + $0x68] sm:$0xff]  ;;  %v310_v35 = vld [vmem:[%s1933_s28 + $0x70] sm:$0xff] }
  0x22   : > { %v541_v32 = vld [vmem:[%s1938_s10 + $0x60] sm:$0xff]  ;;  %v542_v34 = vld [vmem:[%s1938_s10 + $0x68] sm:$0xff]  ;;  %v543_v36 = vld [vmem:[%s1938_s10 + $0x70] sm:$0xff] }
  0x23   : > { %v311_v37 = vld [vmem:[%s1933_s28 + $0x78] sm:$0xff]  ;;  %s2174_s28 = scalar_lea.hbm %s2219_s5, %s1905_s15 }
  0x24   : > { %1505 = vmatmul.mubr.msk.f32.gmra.mrb[2].mxu0 %vm323_vm0, %v299_v13  ;;  %1537 = vmatmul.mubr.msk.f32.gmra.mrb[2].mxu1 %vm323_vm0, %v532_v14  ;;  %v544_v38 = vld [vmem:[%s1938_s10 + $0x78] sm:$0xff]  ;;  %s1811_s10 = smov [#allocation3]  }
  0x25   : > { %1507 = vmatprep.mubr.msk.f32.mxu0 %vm323_vm0, %v300_v15  ;;  %1539 = vmatprep.mubr.msk.f32.mxu1 %vm323_vm0, %v533_v16  ;;  %s1747_s11 = sshll.u32 %s1811_s10, 4  ;;  %s1748_s11 = int_to_ptr.vmem [resolvable:$false] %s1747_s11 }
  0x26   : > { %s1749_s12 = scalar_lea.vmem %s1748_s11, 32  ;;  %p1750_p1 = scmp.lt.s32.totalorder %s1203_s19, %s1748_s11 }
  0x27   : > { %p1751_p2 = scmp.lt.s32.totalorder %s1749_s12, %s1743_s9 }
  0x28   : > { %1508 = vmatmul.mubr.msk.f32.gmra.mrb[4].mxu0 %vm323_vm0, %v301_v17  ;;  %1540 = vmatmul.mubr.msk.f32.gmra.mrb[4].mxu1 %vm323_vm0, %v534_v18 }
  0x29   : > { %1510 = vmatprep.mubr.msk.f32.mxu0 %vm323_vm0, %v302_v19  ;;  %1542 = vmatprep.mubr.msk.f32.mxu1 %vm323_vm0, %v535_v20  ;;  %p1752_p3 = por %p1751_p2, %p1750_p1 }
  0x2b   : > { %p1753_p4 = pnand %p1752_p3, %p1746_p0 }
  0x2c   : > { %1511 = vmatmul.mubr.msk.f32.gmra.mrb[6].mxu0 %vm323_vm0, %v303_v21  ;;  %1543 = vmatmul.mubr.msk.f32.gmra.mrb[6].mxu1 %vm323_vm0, %v536_v22 }
  0x2d   : > { %1513 = vmatprep.mubr.msk.f32.mxu0 %vm323_vm0, %v304_v23  ;;  %1545 = vmatprep.mubr.msk.f32.mxu1 %vm323_vm0, %v537_v24 }
  0x30   : > { %1514 = vmatmul.mubr.msk.f32.gmra.mrb[8].mxu0 %vm323_vm0, %v305_v25  ;;  %1546 = vmatmul.mubr.msk.f32.gmra.mrb[8].mxu1 %vm323_vm0, %v538_v26 }
  0x31   : > { %1516 = vmatprep.mubr.msk.f32.mxu0 %vm323_vm0, %v306_v27  ;;  %1548 = vmatprep.mubr.msk.f32.mxu1 %vm323_vm0, %v539_v28 }
  0x34   : > { %1517 = vmatmul.mubr.msk.f32.gmra.mrb[10].mxu0 %vm323_vm0, %v307_v29  ;;  %1549 = vmatmul.mubr.msk.f32.gmra.mrb[10].mxu1 %vm323_vm0, %v540_v30 }
  0x35   : > { %1519 = vmatprep.mubr.msk.f32.mxu0 %vm323_vm0, %v308_v31  ;;  %1551 = vmatprep.mubr.msk.f32.mxu1 %vm323_vm0, %v541_v32 }
  0x38   : > { %1520 = vmatmul.mubr.msk.f32.gmra.mrb[12].mxu0 %vm323_vm0, %v309_v33  ;;  %1552 = vmatmul.mubr.msk.f32.gmra.mrb[12].mxu1 %vm323_vm0, %v542_v34 }
  0x39   : > { %1522 = vmatprep.mubr.msk.f32.mxu0 %vm323_vm0, %v310_v35  ;;  %1554 = vmatprep.mubr.msk.f32.mxu1 %vm323_vm0, %v543_v36 }
  0x3c   : > { %1523 = vmatmul.mubr.msk.f32.gmra.mrb[14].mxu0 %vm323_vm0, %v311_v37  ;;  %1555 = vmatmul.mubr.msk.f32.gmra.mrb[14].mxu1 %vm323_vm0, %v544_v38 }
  0x3d   : > { %1474 = vmatprep.mubr.msk.f32.mxu0 %vm754_vm2, %v1808_v40  ;;  %1589 = vmatprep.mubr.msk.f32.mxu1 %vm1809_vm3, %v1810_v41 }
  0xf3   : > { %v1503_v43 = vpop.f32.mrb[0].mxu0  ;;  %v1535_v44 = vpop.f32.mrb[0].mxu1 }
  0xf4   : > { %v456_v45 = vadd.f32 %v1503_v43, %v2014_v42  ;;  %v665_v46 = vadd.f32 %v1535_v44, %v2014_v42  ;;  %v450_v47 = vpop.f32.mrb[1].mxu0  ;;  %v659_v48 = vpop.f32.mrb[1].mxu1 }
  0xf5   : > { %v451_v49 = vadd.f32 %v2014_v42, %v450_v47  ;;  %v660_v50 = vadd.f32 %v2014_v42, %v659_v48 }
  0xf6   : > { %v772_v51 = vmul.f32 %v456_v45, %v456_v45  ;;  %v739_v52 = vmul.f32 %v665_v46, %v456_v45  ;;  %v804_v53 = vmul.f32 %v665_v46, %v665_v46 }
  0xf7   : > { %v771_v54 = vmul.f32 %v451_v49, %v451_v49  ;;  %v738_v55 = vmul.f32 %v660_v50, %v451_v49  ;;  %v803_v56 = vmul.f32 %v660_v50, %v660_v50  ;;  %v1506_v57 = vpop.f32.mrb[2].mxu0  ;;  %v1538_v58 = vpop.f32.mrb[2].mxu1 }
  0xf8   : > { %788 = vst.msk [vmem:[#allocation2 + $0x88] sm:$0xff] %vm754_vm2, %v772_v51  ;;  %756 = vst.msk [vmem:[#allocation2 + $0x8] sm:$0xff] %vm754_vm2, %v739_v52  ;;  %v466_v59 = vadd.f32 %v1506_v57, %v2014_v42  ;;  %v675_v60 = vadd.f32 %v1538_v58, %v2014_v42  ;;  %v460_v61 = vpop.f32.mrb[3].mxu0  ;;  %v669_v62 = vpop.f32.mrb[3].mxu1 }
  0xf9   : > { %820 = vst.msk [vmem:[#allocation2 + $0x108] sm:$0xff] %vm754_vm2, %v804_v53  ;;  %787 = vst.msk [vmem:[#allocation2 + $0x80] sm:$0xff] %vm754_vm2, %v771_v54  ;;  %v461_v63 = vadd.f32 %v2014_v42, %v460_v61  ;;  %v670_v0 = vadd.f32 %v2014_v42, %v669_v62 }
  0xfa   : > { %755 = vst.msk [vmem:[#allocation2] sm:$0xff] %vm754_vm2, %v738_v55  ;;  %819 = vst.msk [vmem:[#allocation2 + $0x100] sm:$0xff] %vm754_vm2, %v803_v56  ;;  %v774_v1 = vmul.f32 %v466_v59, %v466_v59  ;;  %v741_v2 = vmul.f32 %v675_v60, %v466_v59  ;;  %v806_v3 = vmul.f32 %v675_v60, %v675_v60 }
  0xfb   : > { %v773_v4 = vmul.f32 %v461_v63, %v461_v63  ;;  %v740_v5 = vmul.f32 %v670_v0, %v461_v63  ;;  %v805_v6 = vmul.f32 %v670_v0, %v670_v0  ;;  %v1509_v7 = vpop.f32.mrb[4].mxu0  ;;  %v1541_v8 = vpop.f32.mrb[4].mxu1 }
  0xfc   : > { %790 = vst.msk [vmem:[#allocation2 + $0x98] sm:$0xff] %vm754_vm2, %v774_v1  ;;  %758 = vst.msk [vmem:[#allocation2 + $0x18] sm:$0xff] %vm754_vm2, %v741_v2  ;;  %v476_v9 = vadd.f32 %v1509_v7, %v2014_v42  ;;  %v685_v10 = vadd.f32 %v1541_v8, %v2014_v42  ;;  %v470_v11 = vpop.f32.mrb[5].mxu0  ;;  %v679_v12 = vpop.f32.mrb[5].mxu1 }
  0xfd   : > { %822 = vst.msk [vmem:[#allocation2 + $0x118] sm:$0xff] %vm754_vm2, %v806_v3  ;;  %789 = vst.msk [vmem:[#allocation2 + $0x90] sm:$0xff] %vm754_vm2, %v773_v4  ;;  %v471_v13 = vadd.f32 %v2014_v42, %v470_v11  ;;  %v680_v14 = vadd.f32 %v2014_v42, %v679_v12 }
  0xfe   : > { %757 = vst.msk [vmem:[#allocation2 + $0x10] sm:$0xff] %vm754_vm2, %v740_v5  ;;  %821 = vst.msk [vmem:[#allocation2 + $0x110] sm:$0xff] %vm754_vm2, %v805_v6  ;;  %v776_v15 = vmul.f32 %v476_v9, %v476_v9  ;;  %v743_v16 = vmul.f32 %v685_v10, %v476_v9  ;;  %v808_v17 = vmul.f32 %v685_v10, %v685_v10 }
  0xff   : > { %v775_v19 = vmul.f32 %v471_v13, %v471_v13  ;;  %v742_v20 = vmul.f32 %v680_v14, %v471_v13  ;;  %v807_v21 = vmul.f32 %v680_v14, %v680_v14  ;;  %v852_v22 = vld [vmem:[#allocation2 + $0x88] sm:$0xff]  ;;  %v1512_v25 = vpop.f32.mrb[6].mxu0  ;;  %v1544_v26 = vpop.f32.mrb[6].mxu1 }
 0x100   : > { %v868_v23 = vld [vmem:[#allocation2 + $0x108] sm:$0xff]  ;;  %792 = vst.msk [vmem:[#allocation2 + $0xa8] sm:$0xff] %vm754_vm2, %v776_v15  ;;  %760 = vst.msk [vmem:[#allocation2 + $0x28] sm:$0xff] %vm754_vm2, %v743_v16  ;;  %v851_v27 = vld [vmem:[#allocation2 + $0x80] sm:$0xff]  ;;  %v486_v30 = vadd.f32 %v1512_v25, %v2014_v42  ;;  %v695_v31 = vadd.f32 %v1544_v26, %v2014_v42  ;;  %v480_v32 = vpop.f32.mrb[7].mxu0  ;;  %v689_v33 = vpop.f32.mrb[7].mxu1 }
 0x101   : > { %v836_v24 = vld [vmem:[#allocation2 + $0x8] sm:$0xff]  ;;  %824 = vst.msk [vmem:[#allocation2 + $0x128] sm:$0xff] %vm754_vm2, %v808_v17  ;;  %v867_v28 = vld [vmem:[#allocation2 + $0x100] sm:$0xff]  ;;  %791 = vst.msk [vmem:[#allocation2 + $0xa0] sm:$0xff] %vm754_vm2, %v775_v19  ;;  %v1616_v34 = vpack.c.bf16 %v852_v22, %v851_v27  ;;  %v481_v37 = vadd.f32 %v2014_v42, %v480_v32  ;;  %v690_v44 = vadd.f32 %v2014_v42, %v689_v33 }
 0x102   : > { %v835_v29 = vld [vmem:[#allocation2] sm:$0xff]  ;;  %759 = vst.msk [vmem:[#allocation2 + $0x20] sm:$0xff] %vm754_vm2, %v742_v20  ;;  %823 = vst.msk [vmem:[#allocation2 + $0x120] sm:$0xff] %vm754_vm2, %v807_v21  ;;  %v1665_v35 = vpack.c.bf16 %v868_v23, %v867_v28  ;;  %v778_v38 = vmul.f32 %v486_v30, %v486_v30  ;;  %v745_v41 = vmul.f32 %v695_v31, %v486_v30 }
 0x103   : > { %v1619_v36 = vpack.c.bf16 %v836_v24, %v835_v29  ;;  %v810_v43 = vmul.f32 %v695_v31, %v695_v31  ;;  %1618 = vmatprep.subr.msk.bf16.mxu0 %vm2042_vm4, %v1616_v34  ;;  %v854_v45 = vld [vmem:[#allocation2 + $0x98] sm:$0xff]  ;;  %v777_v46 = vmul.f32 %v481_v37, %v481_v37  ;;  %v1515_v47 = vpop.f32.mrb[8].mxu0  ;;  %v1547_v48 = vpop.f32.mrb[8].mxu1  ;;  %v744_v50 = vmul.f32 %v690_v44, %v481_v37 }
 0x104   : > { %1667 = vmatpush3.bf16.xpose.msk.msra.mxu1 %vm2042_vm4, %v1665_v35  ;;  %794 = vst.msk [vmem:[#allocation2 + $0xb8] sm:$0xff] %vm754_vm2, %v778_v38  ;;  %762 = vst.msk [vmem:[#allocation2 + $0x38] sm:$0xff] %vm754_vm2, %v745_v41  ;;  %v853_v49 = vld [vmem:[#allocation2 + $0x90] sm:$0xff]  ;;  %v809_v51 = vmul.f32 %v690_v44, %v690_v44  ;;  %v870_v53 = vld [vmem:[#allocation2 + $0x118] sm:$0xff]  ;;  %v496_v54 = vadd.f32 %v1515_v47, %v2014_v42  ;;  %v490_v55 = vpop.f32.mrb[9].mxu0  ;;  %v699_v56 = vpop.f32.mrb[9].mxu1  ;;  %v705_v58 = vadd.f32 %v1547_v48, %v2014_v42 }
 0x105   : > { %1621 = vmatpush3.bf16.xpose.msk.msra.mxu0 %vm2042_vm4, %v1619_v36  ;;  %826 = vst.msk [vmem:[#allocation2 + $0x138] sm:$0xff] %vm754_vm2, %v810_v43  ;;  %1668 = vmatprep.subr.bf16.mxu1 %v1807_v39  ;;  %v869_v52 = vld [vmem:[#allocation2 + $0x110] sm:$0xff]  ;;  %v1622_v57 = vpack.c.bf16 %v854_v45, %v853_v49  ;;  %793 = vst.msk [vmem:[#allocation2 + $0xb0] sm:$0xff] %vm754_vm2, %v777_v46  ;;  %v491_v60 = vadd.f32 %v2014_v42, %v490_v55  ;;  %v838_v0 = vld [vmem:[#allocation2 + $0x18] sm:$0xff] }
 0x106   : > { %761 = vst.msk [vmem:[#allocation2 + $0x30] sm:$0xff] %vm754_vm2, %v744_v50  ;;  %825 = vst.msk [vmem:[#allocation2 + $0x130] sm:$0xff] %vm754_vm2, %v809_v51  ;;  %v780_v59 = vmul.f32 %v496_v54, %v496_v54  ;;  %v700_v61 = vadd.f32 %v2014_v42, %v699_v56  ;;  %v1669_v62 = vpack.c.bf16 %v870_v53, %v869_v52  ;;  %v837_v63 = vld [vmem:[#allocation2 + $0x10] sm:$0xff] }
 0x107   : > { %1624 = vmatprep.subr.msk.bf16.mxu0 %vm2042_vm4, %v1622_v57  ;;  %v747_v1 = vmul.f32 %v705_v58, %v496_v54  ;;  %v812_v2 = vmul.f32 %v705_v58, %v705_v58  ;;  %v856_v3 = vld [vmem:[#allocation2 + $0xa8] sm:$0xff]  ;;  %v1518_v4 = vpop.f32.mrb[10].mxu0  ;;  %v1550_v5 = vpop.f32.mrb[10].mxu1  ;;  %v779_v7 = vmul.f32 %v491_v60, %v491_v60  ;;  %v1625_v15 = vpack.c.bf16 %v838_v0, %v837_v63 }
 0x108   : > { %796 = vst.msk [vmem:[#allocation2 + $0xc8] sm:$0xff] %vm754_vm2, %v780_v59  ;;  %v855_v6 = vld [vmem:[#allocation2 + $0xa0] sm:$0xff]  ;;  %v746_v8 = vmul.f32 %v700_v61, %v491_v60  ;;  %v811_v9 = vmul.f32 %v700_v61, %v700_v61  ;;  %v506_v10 = vadd.f32 %v1518_v4, %v2014_v42  ;;  %v500_v11 = vpop.f32.mrb[11].mxu0  ;;  %v709_v12 = vpop.f32.mrb[11].mxu1  ;;  %v715_v14 = vadd.f32 %v1550_v5, %v2014_v42  ;;  %v872_v21 = vld [vmem:[#allocation2 + $0x128] sm:$0xff] }
 0x109   : > { %764 = vst.msk [vmem:[#allocation2 + $0x48] sm:$0xff] %vm754_vm2, %v747_v1  ;;  %828 = vst.msk [vmem:[#allocation2 + $0x148] sm:$0xff] %vm754_vm2, %v812_v2  ;;  %v1628_v13 = vpack.c.bf16 %v856_v3, %v855_v6  ;;  %v501_v17 = vadd.f32 %v2014_v42, %v500_v11  ;;  %v710_v19 = vadd.f32 %v2014_v42, %v709_v12  ;;  %v871_v20 = vld [vmem:[#allocation2 + $0x120] sm:$0xff]  ;;  %v840_v41 = vld [vmem:[#allocation2 + $0x28] sm:$0xff] }
 0x10a   : > { %795 = vst.msk [vmem:[#allocation2 + $0xc0] sm:$0xff] %vm754_vm2, %v779_v7  ;;  %763 = vst.msk [vmem:[#allocation2 + $0x40] sm:$0xff] %vm754_vm2, %v746_v8  ;;  %v782_v16 = vmul.f32 %v506_v10, %v506_v10  ;;  %v749_v22 = vmul.f32 %v715_v14, %v506_v10  ;;  %v814_v23 = vmul.f32 %v715_v14, %v715_v14  ;;  %v839_v38 = vld [vmem:[#allocation2 + $0x20] sm:$0xff] }
 0x10b   : > { %827 = vst.msk [vmem:[#allocation2 + $0x140] sm:$0xff] %vm754_vm2, %v811_v9  ;;  %v1521_v24 = vpop.f32.mrb[12].mxu0  ;;  %v1553_v25 = vpop.f32.mrb[12].mxu1  ;;  %v781_v26 = vmul.f32 %v501_v17, %v501_v17  ;;  %v748_v27 = vmul.f32 %v710_v19, %v501_v17  ;;  %v813_v28 = vmul.f32 %v710_v19, %v710_v19  ;;  %v1673_v34 = vpack.c.bf16 %v872_v21, %v871_v20  ;;  %v858_v36 = vld [vmem:[#allocation2 + $0xb8] sm:$0xff] }
 0x10c   : > { %1671 = vmatpush3.bf16.xpose.msk.msra.mxu1 %vm2042_vm4, %v1669_v62  ;;  %798 = vst.msk [vmem:[#allocation2 + $0xd8] sm:$0xff] %vm754_vm2, %v782_v16  ;;  %v510_v29 = vpop.f32.mrb[13].mxu0  ;;  %v719_v30 = vpop.f32.mrb[13].mxu1  ;;  %766 = vst.msk [vmem:[#allocation2 + $0x58] sm:$0xff] %vm754_vm2, %v749_v22  ;;  %v516_v31 = vadd.f32 %v1521_v24, %v2014_v42  ;;  %v725_v32 = vadd.f32 %v1553_v25, %v2014_v42  ;;  %v857_v35 = vld [vmem:[#allocation2 + $0xb0] sm:$0xff]  ;;  %v1631_v58 = vpack.c.bf16 %v840_v41, %v839_v38  ;;  %v842_v6 = vld [vmem:[#allocation2 + $0x38] sm:$0xff] }
 0x10d   : > { %1627 = vmatpush3.bf16.xpose.msk.msra.mxu0 %vm2042_vm4, %v1625_v15  ;;  %1672 = vmatprep.subr.bf16.mxu1 %v1807_v39  ;;  %830 = vst.msk [vmem:[#allocation2 + $0x158] sm:$0xff] %vm754_vm2, %v814_v23  ;;  %v511_v33 = vadd.f32 %v2014_v42, %v510_v29  ;;  %797 = vst.msk [vmem:[#allocation2 + $0xd0] sm:$0xff] %vm754_vm2, %v781_v26  ;;  %v720_v37 = vadd.f32 %v2014_v42, %v719_v30  ;;  %v873_v0 = vld [vmem:[#allocation2 + $0x130] sm:$0xff] }
 0x10e   : > { %1630 = vmatprep.subr.msk.bf16.mxu0 %vm2042_vm4, %v1628_v13  ;;  %765 = vst.msk [vmem:[#allocation2 + $0x50] sm:$0xff] %vm754_vm2, %v748_v27  ;;  %829 = vst.msk [vmem:[#allocation2 + $0x150] sm:$0xff] %vm754_vm2, %v813_v28  ;;  %v784_v43 = vmul.f32 %v516_v31, %v516_v31  ;;  %v751_v44 = vmul.f32 %v725_v32, %v516_v31  ;;  %v816_v45 = vmul.f32 %v725_v32, %v725_v32  ;;  %v841_v5 = vld [vmem:[#allocation2 + $0x30] sm:$0xff] }
 0x10f   : > { %v783_v46 = vmul.f32 %v511_v33, %v511_v33  ;;  %v1524_v47 = vpop.f32.mrb[14].mxu0  ;;  %v1556_v48 = vpop.f32.mrb[14].mxu1  ;;  %v750_v49 = vmul.f32 %v720_v37, %v511_v33  ;;  %v815_v50 = vmul.f32 %v720_v37, %v720_v37  ;;  %v1634_v55 = vpack.c.bf16 %v858_v36, %v857_v35  ;;  %v860_v3 = vld [vmem:[#allocation2 + $0xc8] sm:$0xff] }
 0x110   : > { %v526_v51 = vadd.f32 %v1524_v47, %v2014_v42  ;;  %v735_v52 = vadd.f32 %v1556_v48, %v2014_v42  ;;  %v520_v53 = vpop.f32.mrb[15].mxu0  ;;  %v729_v54 = vpop.f32.mrb[15].mxu1  ;;  %800 = vst.msk [vmem:[#allocation2 + $0xe8] sm:$0xff] %vm754_vm2, %v784_v43  ;;  %768 = vst.msk [vmem:[#allocation2 + $0x68] sm:$0xff] %vm754_vm2, %v751_v44  ;;  %v1637_v8 = vpack.c.bf16 %v842_v6, %v841_v5  ;;  %v876_v10 = vld [vmem:[#allocation2 + $0x148] sm:$0xff] }
 0x111   : > { %832 = vst.msk [vmem:[#allocation2 + $0x168] sm:$0xff] %vm754_vm2, %v816_v45  ;;  %799 = vst.msk [vmem:[#allocation2 + $0xe0] sm:$0xff] %vm754_vm2, %v783_v46  ;;  %v521_v56 = vadd.f32 %v2014_v42, %v520_v53  ;;  %v730_v57 = vadd.f32 %v2014_v42, %v729_v54  ;;  %v874_v42 = vld [vmem:[#allocation2 + $0x138] sm:$0xff]  ;;  %v859_v2 = vld [vmem:[#allocation2 + $0xc0] sm:$0xff] }
 0x112   : > { %767 = vst.msk [vmem:[#allocation2 + $0x60] sm:$0xff] %vm754_vm2, %v750_v49  ;;  %831 = vst.msk [vmem:[#allocation2 + $0x160] sm:$0xff] %vm754_vm2, %v815_v50  ;;  %v786_v59 = vmul.f32 %v526_v51, %v526_v51  ;;  %v753_v60 = vmul.f32 %v735_v52, %v526_v51  ;;  %v818_v61 = vmul.f32 %v735_v52, %v735_v52  ;;  %v875_v9 = vld [vmem:[#allocation2 + $0x140] sm:$0xff]  ;;  %v844_v15 = vld [vmem:[#allocation2 + $0x48] sm:$0xff] }
 0x113   : > { %v785_v62 = vmul.f32 %v521_v56, %v521_v56  ;;  %v752_v63 = vmul.f32 %v730_v57, %v521_v56  ;;  %v817_v1 = vmul.f32 %v730_v57, %v730_v57  ;;  %v1677_v4 = vpack.c.bf16 %v874_v42, %v873_v0  ;;  %v862_v12 = vld [vmem:[#allocation2 + $0xd8] sm:$0xff]  ;;  %v843_v14 = vld [vmem:[#allocation2 + $0x40] sm:$0xff] }
 0x114   : > { %1675 = vmatpush3.bf16.xpose.msk.msra.mxu1 %vm2042_vm4, %v1673_v34  ;;  %802 = vst.msk [vmem:[#allocation2 + $0xf8] sm:$0xff] %vm754_vm2, %v786_v59  ;;  %770 = vst.msk [vmem:[#allocation2 + $0x78] sm:$0xff] %vm754_vm2, %v753_v60  ;;  %v1640_v7 = vpack.c.bf16 %v860_v3, %v859_v2  ;;  %v861_v11 = vld [vmem:[#allocation2 + $0xd0] sm:$0xff]  ;;  %v1681_v13 = vpack.c.bf16 %v876_v10, %v875_v9  ;;  %v1643_v17 = vpack.c.bf16 %v844_v15, %v843_v14  ;;  %v878_v20 = vld [vmem:[#allocation2 + $0x158] sm:$0xff] }
 0x115   : > { %1633 = vmatpush3.bf16.xpose.msk.msra.mxu0 %vm2042_vm4, %v1631_v58  ;;  %1676 = vmatprep.subr.bf16.mxu1 %v1807_v39  ;;  %834 = vst.msk [vmem:[#allocation2 + $0x178] sm:$0xff] %vm754_vm2, %v818_v61  ;;  %801 = vst.msk [vmem:[#allocation2 + $0xf0] sm:$0xff] %vm754_vm2, %v785_v62  ;;  %v1646_v16 = vpack.c.bf16 %v862_v12, %v861_v11  ;;  %v877_v19 = vld [vmem:[#allocation2 + $0x150] sm:$0xff]  ;;  %v846_v25 = vld [vmem:[#allocation2 + $0x58] sm:$0xff] }
 0x116   : > { %1636 = vmatprep.subr.msk.bf16.mxu0 %vm2042_vm4, %v1634_v55  ;;  %769 = vst.msk [vmem:[#allocation2 + $0x70] sm:$0xff] %vm754_vm2, %v752_v63  ;;  %833 = vst.msk [vmem:[#allocation2 + $0x170] sm:$0xff] %vm754_vm2, %v817_v1  ;;  %v1685_v23 = vpack.c.bf16 %v878_v20, %v877_v19  ;;  %v845_v24 = vld [vmem:[#allocation2 + $0x50] sm:$0xff]  ;;  %v1178_v52 = vld [vmem:[%s292_s16] sm:$0x1] }
 0x117   : > { %v864_v22 = vld [vmem:[#allocation2 + $0xe8] sm:$0xff]  ;;  %v1649_v27 = vpack.c.bf16 %v846_v25, %v845_v24 }
 0x118   : > { %v863_v21 = vld [vmem:[#allocation2 + $0xe0] sm:$0xff]  ;;  %v880_v29 = vld [vmem:[#allocation2 + $0x168] sm:$0xff] }
 0x119   : > { %v1652_v26 = vpack.c.bf16 %v864_v22, %v863_v21  ;;  %v879_v28 = vld [vmem:[#allocation2 + $0x160] sm:$0xff]  ;;  %v848_v34 = vld [vmem:[#allocation2 + $0x68] sm:$0xff] }
 0x11a   : > { %v1689_v32 = vpack.c.bf16 %v880_v29, %v879_v28  ;;  %v847_v33 = vld [vmem:[#allocation2 + $0x60] sm:$0xff] }
 0x11b   : > { %v866_v31 = vld [vmem:[#allocation2 + $0xf8] sm:$0xff]  ;;  %v1655_v36 = vpack.c.bf16 %v848_v34, %v847_v33 }
 0x11c   : > { %1679 = vmatpush3.bf16.xpose.msk.msra.mxu1 %vm2042_vm4, %v1677_v4  ;;  %v865_v30 = vld [vmem:[#allocation2 + $0xf0] sm:$0xff]  ;;  %v882_v38 = vld [vmem:[#allocation2 + $0x178] sm:$0xff] }
 0x11d   : > { %1639 = vmatpush3.bf16.xpose.msk.msra.mxu0 %vm2042_vm4, %v1637_v8  ;;  %1680 = vmatprep.subr.bf16.mxu1 %v1807_v39  ;;  %v1658_v35 = vpack.c.bf16 %v866_v31, %v865_v30  ;;  %v881_v37 = vld [vmem:[#allocation2 + $0x170] sm:$0xff]  ;;  %v850_v44 = vld [vmem:[#allocation2 + $0x78] sm:$0xff] }
 0x11e   : > { %1642 = vmatprep.subr.msk.bf16.mxu0 %vm2042_vm4, %v1640_v7  ;;  %v1693_v41 = vpack.c.bf16 %v882_v38, %v881_v37  ;;  %v849_v43 = vld [vmem:[#allocation2 + $0x70] sm:$0xff] }
 0x11f   : > { %v1661_v45 = vpack.c.bf16 %v850_v44, %v849_v43 }
 0x124   : > { %1683 = vmatpush3.bf16.xpose.msk.msra.mxu1 %vm2042_vm4, %v1681_v13 }
 0x125   : > { %1645 = vmatpush3.bf16.xpose.msk.msra.mxu0 %vm2042_vm4, %v1643_v17  ;;  %1684 = vmatprep.subr.bf16.mxu1 %v1807_v39 }
 0x126   : > { %1648 = vmatprep.subr.msk.bf16.mxu0 %vm2042_vm4, %v1646_v16 }
 0x12c   : > { %1687 = vmatpush3.bf16.xpose.msk.msra.mxu1 %vm2042_vm4, %v1685_v23 }
 0x12d   : > { %1651 = vmatpush3.bf16.xpose.msk.msra.mxu0 %vm2042_vm4, %v1649_v27  ;;  %1688 = vmatprep.subr.bf16.mxu1 %v1807_v39 }
 0x12e   : > { %1654 = vmatprep.subr.msk.bf16.mxu0 %vm2042_vm4, %v1652_v26 }
 0x134   : > { %1691 = vmatpush3.bf16.xpose.msk.msra.mxu1 %vm2042_vm4, %v1689_v32 }
 0x135   : > { %1657 = vmatpush3.bf16.xpose.msk.msra.mxu0 %vm2042_vm4, %v1655_v36  ;;  %1692 = vmatprep.subr.bf16.mxu1 %v1807_v39 }
 0x136   : > { %1660 = vmatprep.subr.msk.bf16.mxu0 %vm2042_vm4, %v1658_v35 }
 0x13c   : > { %1695 = vmatpush3.bf16.xpose.msk.msra.mxu1 %vm2042_vm4, %v1693_v41 }
 0x13d   : > { %1663 = vmatpush3.bf16.xpose.msk.msra.mxu0 %vm2042_vm4, %v1661_v45 }
 0x143   : > { %1590 = vmatmul.mubr.msk.f32.vlgmr.msra.gmra.mrb[16].mxu1 %vm754_vm2, %v1808_v40 }
 0x144   : > { %1475 = vmatmul.mubr.msk.f32.vlgmr.msra.gmra.mrb[16].mxu0 %vm754_vm2, %v1808_v40 }
 0x216   : > { %v1167_v39 = vpop.f32.mrb[16].mxu1 }
 0x217   : > { %v1096_v46 = vpop.f32.mrb[16].mxu0  ;;  %v1174_v47 = vmax.f32 %v1167_v39, 1e-08  ;;  %v1591_v48 = vpop.f32.mrb[17].mxu1 }
 0x218   : > { %v1098_v49 = vpop.f32.mrb[17].mxu0 }
 0x219   : > { %v1171_v50 = vmax.f32 %v1098_v49, 1e-08  ;;  %1739 = vrsqrt.f32 %v1174_v47 }
 0x21b   : > { %1741 = vrsqrt.f32 %v1171_v50 }
 0x223   : > { %v1740_v18 = vpop.eup %1739 }
 0x225   : > { %v1742_v40 = vpop.eup %1741 }
 0x226   : > { %v1173_v51 = vmul.f32 %v1742_v40, %v1096_v46 }
 0x228   : > { %v1176_v53 = vmul.f32 %v1740_v18, %v1173_v51 }
 0x22a   : > { %v1179_v54 = vsub.f32 %v1176_v53, %v1178_v52  ;;  %1177 = vst [vmem:[%s272_s18] sm:$0x1] %v1176_v53 }
 0x22c   : > { %v1180_v55 = vmul.f32 %v1179_v54, %v1179_v54 }
 0x22e   : > { %v1182_v56 = vsel %vm1181_vm5, %v1180_v55, 0.0 }
 0x22f   : > { %1183 = vadd.xlane.f32.xlu0 %v1182_v56 }
 0x230   : > { %1756 = shalt.err (!%p1753_p4)
}
 0x231   : > { %s1757_s15 = scalar_lea.hbm %s2174_s28, 16  ;;  %s1761_s16 = scalar_lea.hbm %s2219_s5, 32 }
 0x232   : > { %p1758_p7 = scmp.ne.s32.totalorder %s2174_s28, %s1757_s15  ;;  %p1762_p10 = scmp.lt.u32.totalorder %s2174_s28, %s2219_s5 }
 0x233   : > { %p1763_p11 = scmp.lt.u32.totalorder %s1761_s16, %s1757_s15  ;;  %p1765_p13 = scmp.lt.u32.totalorder %s1757_s15, %s2174_s28 }
 0x234   : > { %p1759_p8 = pnand %p1758_p7, %p1885_p5 }
 0x235   : > { %p1764_p12 = por %p1763_p11, %p1762_p10 }
 0x236   : > { %p1760_p9 = pneg %p1759_p8 }
 0x237   : > { %p1766_p0 = por %p1765_p13, %p1764_p12 }
 0x239   : > { %p1767_p1 = pnand %p1766_p0, %p1760_p9 }
 0x23b   : > { %1770 = shalt.err (!%p1767_p1)
}
 0x23c   : > { %1696 = dma.vmem_to_hbm [thread:$0]  (%p1885_p5), %s1203_s19, 16, %s2174_s28, %s1187_s29  }
 0x23d   : > { %s295_s9 = scalar_lea.vmem %s2220_s6, %s2232_s25 }
 0x2bc   : > { %v1184_v57 = vpop.xlane.xlu0 %1183 }
 0x2bd   : > { %1185 = vst [vmem:[%s295_s9] sm:$0x1] %v1184_v57 }
 0x2be PF: > { %p1702_p2 = scmp.ge.s32.totalorder %s1805_s24, 2  ;;  %s1217_s10 = sand.u32 1, %s1793_s21  }
 0x2bf   : > { %s1218_s11 = scalar_lea.sflag [#allocation4], %s1217_s10 }
 0x2c0   : > { %p1699_p3 = pnand %p1702_p2, %p1889_p6 }
 0x2c2   : > { %1788 = dma.done.wait (!%p1699_p3), %s1218_s11, 16  }
 0x2c3   : > { %1790 = vsyncadd (!%p1699_p3), %s1218_s11, 4294967280  ;;  %p17_p5 = scmp.ge.s32.totalorder %s1872_s27, 4   ;;  %s2227_s21 = smov %s1797_s22 }
 0x2c4   : > { %s2228_s22 = smov %s1801_s23  ;;  %s2229_s23 = smov %s1883_s30 }
 0x2c5   : > { %s2230_s24 = smov %s1872_s27  ;;  %19 = sbr.rel (!%p17_p5) target bundleno = 3 (0x3), region = 93 }
 0x2cc   :  { %1228 = vsyncpa [#allocation4], 1 }
 0x2cd   :  { %1230 = vsyncpa [#allocation4 + $0x1], 1 }

</bundles_post_ra>
